<compile_context>
chip_gen: v7x
topology: tpu7x:2x2x1
jax: 0.10.0
libtpu: 0.0.40
codegen_flags: <defaults>
</compile_context>

<pallas_src>
import functools

import numpy as np

import jax
import jax.numpy as jnp
from jax.experimental import pallas as pl
from jax.experimental.pallas import tpu as pltpu


def _make_fnode_kernel(n_inputs):
    """NCW-tile kernel: x_i (C, TN), weight (C_out, C), shift (C_out, 1), out (C_out, TN)."""

    def kernel(*refs):
        x_refs = refs[:n_inputs]
        w_ref, shift_ref, o_ref = refs[n_inputs:]

        # combine + Conv1d(k=1, bias=False) fused on the MXU:
        #     W @ (sum_i x_i)  ==  sum_i (W @ x_i)
        # Each per-input dot uses preferred_element_type=f32, so bf16 inputs use
        # the MXU's native bf16 path and the sum lands in the f32 accumulator
        # (no VPU upcast; matches the f32-sum reference numerics).
        y = jnp.dot(w_ref[...], x_refs[0][...], preferred_element_type=jnp.float32)
        for r in x_refs[1:]:
            y = y + jnp.dot(w_ref[...], r[...], preferred_element_type=jnp.float32)

        # BatchNorm1d(eval) shift (scale pre-folded into W) + ReLU, lane-dense store.
        o_ref[...] = jnp.maximum(y + shift_ref[...], 0.0).astype(o_ref.dtype)

    return kernel


def fnode_forward(x_list_cn, conv_w, bn_gamma, bn_beta, bn_mean, bn_var,
                  eps=1e-5, tile_n=8192, out_dtype=None):
    """Lane-dense NCW path.

    x_list_cn : list of (C, N) arrays -- channel-major point features, i.e. the
                layout Fnode feeds to Conv1d after `combine_feat.permute(1, 0)`.
    conv_w    : (C_out, C) Conv1d weight (kernel_size=1 squeezed).
    Returns (C_out, N).
    """
    C, N = x_list_cn[0].shape
    C_out = conv_w.shape[0]
    in_dtype = x_list_cn[0].dtype
    if out_dtype is None:
        out_dtype = in_dtype
    n_in = len(x_list_cn)

    # Fold BN (eval) in f32: scale goes into the weight, only the shift remains.
    scale = bn_gamma.astype(jnp.float32) / jnp.sqrt(bn_var.astype(jnp.float32) + eps)
    w_scaled = conv_w.astype(jnp.float32) * scale[:, None]                    # (C_out, C)
    shift = (bn_beta.astype(jnp.float32)
             - bn_mean.astype(jnp.float32) * scale).reshape(C_out, 1)         # (C_out, 1)
    # Keep bf16 inputs on the native bf16 MXU path: weight dtype follows input.
    w_dtype = jnp.bfloat16 if np.dtype(in_dtype) == np.dtype(jnp.bfloat16) else jnp.float32
    w_scaled = w_scaled.astype(w_dtype)

    in_bytes = np.dtype(in_dtype).itemsize
    out_bytes = np.dtype(out_dtype).itemsize

    # --- tile sizing: lane-dense, large (amortize ~0.35us/step), VMEM-capped.
    n_lanes = pl.cdiv(N, 128) * 128
    tile = max(128, (min(int(tile_n), n_lanes) // 128) * 128)
    if n_lanes > 128 and pl.cdiv(N, tile) < 2:
        # v7x megacore: give both TensorCores a grid step when N allows.
        tile = max(128, pl.cdiv(n_lanes // 2, 128) * 128)
    # Cap so the double-buffered tiles stay well inside the default scoped VMEM
    # on every generation (v5e 16 MiB scoped; v7x 64 MiB physical per TC).
    bytes_per_col = 2 * (n_in * C * in_bytes + C_out * out_bytes)
    vmem_cap = 12 * 1024 * 1024
    tile = min(tile, max(128, ((vmem_cap // bytes_per_col) // 128) * 128))

    grid = (pl.cdiv(N, tile),)

    # Ragged N: no host pad / output slice.  The last partial block's OOB input
    # columns contain garbage that flows through the matmul/ReLU but is masked
    # on store.  This is safe ONLY because the contraction axis is C (never N);
    # any future reduction over N must reintroduce explicit padding/masking.
    cost = pl.CostEstimate(
        flops=2 * n_in * C_out * C * N,
        transcendentals=0,
        bytes_accessed=(n_in * C * N * in_bytes + C_out * N * out_bytes
                        + C_out * C * np.dtype(w_dtype).itemsize + C_out * 4),
    )

    return pl.pallas_call(
        _make_fnode_kernel(n_in),
        out_shape=jax.ShapeDtypeStruct((C_out, N), out_dtype),
        grid_spec=pltpu.PrefetchScalarGridSpec(
            num_scalar_prefetch=0,
            grid=grid,
            in_specs=(
                [pl.BlockSpec((C, tile), lambda i: (0, i)) for _ in range(n_in)]
                + [pl.BlockSpec((C_out, C), lambda i: (0, 0)),   # folded weight, resident
                   pl.BlockSpec((C_out, 1), lambda i: (0, 0))]   # BN shift, resident
            ),
            out_specs=pl.BlockSpec((C_out, tile), lambda i: (0, i)),
        ),
        compiler_params=pltpu.CompilerParams(
            dimension_semantics=("parallel",)),
        cost_estimate=cost,
    )(*x_list_cn, w_scaled, shift)


def fnode_forward_nc(x_list_nc, *args, **kwargs):
    """Module-faithful interface: List[(N, C)] -> (N, C_out).

    Mirrors the permute(1, 0) layout glue in Fnode.forward around the
    lane-dense NCW kernel.  Prefer calling `fnode_forward` directly with
    channel-major data: each standalone transpose here is a full extra
    read+write of a tensor on a memory-bound op.
    """
    out_cn = fnode_forward([x.T for x in x_list_nc], *args, **kwargs)
    return out_cn.T


def _reference_nc(x_list_nc, conv_w, bn_gamma, bn_beta, bn_mean, bn_var, eps=1e-5):
    s = functools.reduce(lambda a, b: a + b, x_list_nc)            # (N, C)
    y = s @ conv_w.T                                               # Conv1d k=1 == matmul
    y = (y - bn_mean) / jnp.sqrt(bn_var + eps) * bn_gamma + bn_beta
    return jnp.maximum(y, 0.0)                                     # (N, C_out)


if __name__ == "__main__":
    key = jax.random.PRNGKey(0)
    k1, k2, kw, kg, kb, km, kv = jax.random.split(key, 7)

    # Small, ragged point count (exercises the partial last block + 2-step grid).
    N, C, C_out = 300, 32, 64

    # Point features in the module's (N, C) layout ...
    x1_nc = jax.random.normal(k1, (N, C), dtype=jnp.float32)
    x2_nc = jax.random.normal(k2, (N, C), dtype=jnp.float32)
    # ... and in the Conv1d-native (C, N) layout the kernel consumes.
    x1_cn, x2_cn = x1_nc.T, x2_nc.T

    # Conv1d(C, C_out, k=1, bias=False) weight, kaiming_normal (fan_in = C).
    conv_w = jax.random.normal(kw, (C_out, C), dtype=jnp.float32) * jnp.sqrt(2.0 / C)

    # Non-trivial BatchNorm1d (eval) parameters to exercise the fold.
    bn_gamma = 0.5 + jax.random.uniform(kg, (C_out,), dtype=jnp.float32)
    bn_beta = 0.1 * jax.random.normal(kb, (C_out,), dtype=jnp.float32)
    bn_mean = 0.1 * jax.random.normal(km, (C_out,), dtype=jnp.float32)
    bn_var = 0.5 + jax.random.uniform(kv, (C_out,), dtype=jnp.float32)

    ref = _reference_nc([x1_nc, x2_nc], conv_w, bn_gamma, bn_beta, bn_mean, bn_var)

    # 1) Lane-dense NCW path (primary, f32, ragged N / partial tail block).
    out_cn = fnode_forward([x1_cn, x2_cn], conv_w, bn_gamma, bn_beta, bn_mean, bn_var)
    out_cn = jax.block_until_ready(out_cn)
    assert out_cn.shape == (C_out, N)
    assert jnp.allclose(out_cn.T, ref, atol=1e-4, rtol=1e-4)

    # 2) Module-faithful (N, C) -> (N, C_out) wrapper.
    out_nc = fnode_forward_nc([x1_nc, x2_nc], conv_w, bn_gamma, bn_beta, bn_mean, bn_var)
    out_nc = jax.block_until_ready(out_nc)
    assert out_nc.shape == (N, C_out)
    assert jnp.allclose(out_nc, ref, atol=1e-4, rtol=1e-4)

    # 3) bf16 point-feature streams: native MXU bf16 path, f32 accumulation.
    out_bf = fnode_forward([x1_cn.astype(jnp.bfloat16), x2_cn.astype(jnp.bfloat16)],
                           conv_w, bn_gamma, bn_beta, bn_mean, bn_var)
    out_bf = jax.block_until_ready(out_bf)
    assert out_bf.dtype == jnp.bfloat16
    assert jnp.allclose(out_bf.T.astype(jnp.float32), ref, atol=1.5e-1, rtol=1.5e-1)

    # 4) f32 inputs with bf16 output (cuts the largest HBM stream by 2x).
    out_mix = fnode_forward([x1_cn, x2_cn], conv_w, bn_gamma, bn_beta, bn_mean, bn_var,
                            out_dtype=jnp.bfloat16)
    out_mix = jax.block_until_ready(out_mix)
    assert out_mix.dtype == jnp.bfloat16
    assert jnp.allclose(out_mix.T.astype(jnp.float32), ref, atol=5e-2, rtol=5e-2)

    print("KERNEL_OK")
</pallas_src>

<mosaic_0001>
module attributes {stable_mosaic.version = 11 : i64} {
  func.func @kernel(%arg0: i32, %arg1: memref<32x256xf32, #tpu.memory_space<vmem>>, %arg2: memref<32x256xf32, #tpu.memory_space<vmem>>, %arg3: memref<64x32xf32, #tpu.memory_space<vmem>>, %arg4: memref<64x1xf32, #tpu.memory_space<vmem>>, %arg5: memref<64x256xf32, #tpu.memory_space<vmem>>) attributes {dimension_semantics = [#tpu.dimension_semantics<parallel>], iteration_bounds = array<i64: 2>, scalar_prefetch = 0 : i64, scratch_operands = 0 : i64, tpu.core_type = #tpu.core_type<tc>, window_params = [{transform_indices = @transform_0, window_bounds = array<i64: 32, 256>}, {transform_indices = @transform_1, window_bounds = array<i64: 32, 256>}, {pipeline_mode = #tpu.pipeline_mode<synchronous>, transform_indices = @transform_2, window_bounds = array<i64: 64, 32>}, {pipeline_mode = #tpu.pipeline_mode<synchronous>, transform_indices = @transform_3, window_bounds = array<i64: 64, 1>}, {transform_indices = @transform_4, window_bounds = array<i64: 64, 256>}]} {
    %c0 = arith.constant 0 : index
    %c0_0 = arith.constant 0 : index
    %0 = vector.load %arg3[%c0, %c0_0] : memref<64x32xf32, #tpu.memory_space<vmem>>, vector<64x32xf32>
    %c0_1 = arith.constant 0 : index
    %c0_2 = arith.constant 0 : index
    %1 = vector.load %arg1[%c0_1, %c0_2] : memref<32x256xf32, #tpu.memory_space<vmem>>, vector<32x256xf32>
    %cst = arith.constant dense<0.000000e+00> : vector<64x256xf32>
    %2 = tpu.matmul %0, %1, %cst {dimension_numbers = #tpu.dot_dimension_numbers<[1], [0], [0], [1], [0, 0, 1, 1], [], []>} : vector<64x32xf32>, vector<32x256xf32>, vector<64x256xf32> -> vector<64x256xf32>
    %c0_3 = arith.constant 0 : index
    %c0_4 = arith.constant 0 : index
    %3 = vector.load %arg3[%c0_3, %c0_4] : memref<64x32xf32, #tpu.memory_space<vmem>>, vector<64x32xf32>
    %c0_5 = arith.constant 0 : index
    %c0_6 = arith.constant 0 : index
    %4 = vector.load %arg2[%c0_5, %c0_6] : memref<32x256xf32, #tpu.memory_space<vmem>>, vector<32x256xf32>
    %cst_7 = arith.constant dense<0.000000e+00> : vector<64x256xf32>
    %5 = tpu.matmul %3, %4, %cst_7 {dimension_numbers = #tpu.dot_dimension_numbers<[1], [0], [0], [1], [0, 0, 1, 1], [], []>} : vector<64x32xf32>, vector<32x256xf32>, vector<64x256xf32> -> vector<64x256xf32>
    %6 = arith.addf %2, %5 : vector<64x256xf32>
    %c0_8 = arith.constant 0 : index
    %c0_9 = arith.constant 0 : index
    %7 = vector.load %arg4[%c0_8, %c0_9] : memref<64x1xf32, #tpu.memory_space<vmem>>, vector<64x1xf32>
    %8 = vector.broadcast %7 : vector<64x1xf32> to vector<64x256xf32>
    %9 = arith.addf %6, %8 : vector<64x256xf32>
    %cst_10 = arith.constant 0.000000e+00 : f32
    %10 = vector.broadcast %cst_10 : f32 to vector<64x256xf32>
    %11 = arith.maximumf %9, %10 : vector<64x256xf32>
    %c0_11 = arith.constant 0 : index
    %c0_12 = arith.constant 0 : index
    %12 = vector.load %arg5[%c0_11, %c0_12] : memref<64x256xf32, #tpu.memory_space<vmem>>, vector<64x256xf32>
    tpu.vector_store %arg5[%c0_11, %c0_12], %11 {strides = array<i32>} : memref<64x256xf32, #tpu.memory_space<vmem>>, vector<64x256xf32>,
    return
  }
  func.func @transform_0(%arg0: i32) -> (i32, i32) {
    %c0_i32 = arith.constant 0 : i32
    %c0_i32_0 = arith.constant 0 : i32
    return %c0_i32, %arg0 : i32, i32
  }
  func.func @transform_1(%arg0: i32) -> (i32, i32) {
    %c0_i32 = arith.constant 0 : i32
    %c0_i32_0 = arith.constant 0 : i32
    return %c0_i32, %arg0 : i32, i32
  }
  func.func @transform_2(%arg0: i32) -> (i32, i32) {
    %c0_i32 = arith.constant 0 : i32
    %c0_i32_0 = arith.constant 0 : i32
    %c0_i32_1 = arith.constant 0 : i32
    return %c0_i32, %c0_i32_0 : i32, i32
  }
  func.func @transform_3(%arg0: i32) -> (i32, i32) {
    %c0_i32 = arith.constant 0 : i32
    %c0_i32_0 = arith.constant 0 : i32
    %c0_i32_1 = arith.constant 0 : i32
    return %c0_i32, %c0_i32_0 : i32, i32
  }
  func.func @transform_4(%arg0: i32) -> (i32, i32) {
    %c0_i32 = arith.constant 0 : i32
    %c0_i32_0 = arith.constant 0 : i32
    return %c0_i32, %arg0 : i32, i32
  }
}

</mosaic_0001>

<bundles_post_ra>
// kernel: tpu_custom_call.1
= control target key start
LH: loop header
LB: loop body
LE: loop exit
PB: predicated region body
PF: predicated region fallthrough
CT: control target
= control target key end

     0   :  { %s2398_s0 = inlined_call_operand.vmem [shape: f32[32,300], index: 0, kind: input, shape index: {}]   ;;  %s2399_s1 = inlined_call_operand.hbm [shape: f32[32,300], index: 1, kind: input, shape index: {}]   ;;  %s2400_s2 = inlined_call_operand.vmem [shape: f32[64,32], index: 2, kind: input, shape index: {}]   ;;  %s2401_s3 = inlined_call_operand.vmem [shape: f32[64,1], index: 3, kind: input, shape index: {}]   ;;  %s2402_s4 = inlined_call_operand.hbm [shape: f32[64,300], index: 4, kind: output, shape index: {}]  }
   0x1   :  { %2406 = sst [smem:[#allocation11_spill]] %s2398_s0 }
   0x2   :  { %9 = vsyncpa [#allocation4], 0 }
   0x3   :  { %11 = vsyncpa [#allocation4 + $0x1], 0 }
   0x4   :  { %12 = vsyncpa [#allocation5], 0 }
   0x5   :  { %14 = vsyncpa [#allocation5 + $0x1], 0  ;;  %s1803_s15 = smov 0   ;;  %s1805_s16 = smov 0  }
   0x6   :  { %s1807_s17 = smov 0   ;;  %s1809_s18 = smov 0  }
   0x7 LB: > { %s1824_s19 = sadd.s32 4294967295, %s1702_s18   ;;  %s1256_s20 = sadd.s32 4294967294, %s1702_s18   ;;  %s1702_s18 = sphi %s1809_s18, %s2428_s18   ;;  %s1698_s17 = sphi %s1807_s17, %s2432_s17   ;;  %s1694_s16 = sphi %s1805_s16, %s2431_s16   ;;  %s1690_s15 = sphi %s1803_s15, %s2430_s15  }
   0x8   : > { %s1828_s21 = sadd.s32 1, %s1702_s18   ;;  %s27_s22 = sadd.s32 1, %s1698_s17 }
   0x9   : > { %2407 = sst [smem:[#allocation9_spill]] %s1828_s21  ;;  %s24_s23 = ssub.s32 %s1702_s18, %s1828_s21 }
   0xa   : > { %p34_p0 = scmp.ne.s32.totalorder %s1698_s17, %s1694_s16  ;;  %p25_p1 = scmp.eq.s32.totalorder %s24_s23, 0 }
   0xb   : > { %p35_p2 = scmp.eq.s32.totalorder %s1702_s18, 0  ;;  %p66_p3 = scmp.ne.s32.totalorder %s1694_s16, %s1690_s15 }
   0xc   : > { %p67_p4 = scmp.eq.s32.totalorder %s1824_s19, 0  ;;  %p132_p7 = scmp.eq.s32.totalorder %s1824_s19, 1 }
   0xd   : > { %s1840_s24 = scalar_select %p25_p1, %s1698_s17, %s27_s22  }
   0xe   : > { %p1842_p5 = por %p35_p2, %p34_p0  ;;  %p1846_p6 = por %p67_p4, %p66_p3 }
   0xf   : > { %2408 = sst [smem:[#allocation10_spill]] %s1840_s24  ;;  %p138_p8 = scmp.eq.s32.totalorder %s1256_s20, 1 }
  0x10   : > { %p1851_p9 = por %p132_p7, %p34_p0  ;;  %p2405_p11 = scmp.ge.s32.totalorder %s1702_s18, 2 }
  0x11   : > { %p1855_p10 = por %p138_p8, %p66_p3 }
  0x12   : > { %160 = sbr.rel (%p2405_p11) target bundleno = 194 (0xc2), region = 24 }
  0x13   : > { %s2412_s28 = scalar_select %p1855_p10, 1, 0 }
  0x19   : > { %163 = sbr.rel (!%p1842_p5) target bundleno = 159 (0x9f), region = 28  ;;  %s165_s29 = sand.u32 (%p1842_p5), 1, %s1698_s17  }
  0x1a   : > { %s1260_s30 = sshll.u32 (%p1842_p5), %s1702_s18, 1  ;;  %s1259_s5 = sshll.u32 (%p1842_p5), %s165_s29, 6 }
  0x1b   : > { %s169_s6 = ssub.s32 (%p1842_p5), 3, %s1260_s30  ;;  %s1324_s7 = sshll.u32 (%p1842_p5), %s1702_s18, 4 }
  0x1c   : > { %p170_p12 = scmp.lt.s32.totalorder (%p1842_p5), %s169_s6, 2  ;;  %s2413_s0 = sld [smem:[#allocation11_spill]] (%p1842_p5) }
  0x1d   : > { %s1874_s13 = scalar_lea.vmem (%p1842_p5), [#allocation2], %s1259_s5  }
  0x20   : > { %s2434_s6 = smov (!%p170_p12, %s169_s6), 2 }
  0x21   : > { %s1261_s11 = sshll.u32 %s2434_s6, 9  ;;  %s1872_s12 = sshll.u32 %s2434_s6, 3 }
  0x22   : > { %s1870_s10 = scalar_lea.vmem %s2413_s0, %s1324_s7   ;;  %p1265_p13 = scmp.eq.s32.totalorder %s1261_s11, 0 }
  0x23   : > { %p180_p0 = scmp.lt.u32.totalorder (!%p1265_p13), %s1872_s12, 8 }
  0x24   : > { %179 = sbr.rel (%p1265_p13) target bundleno = 159 (0x9f), region = 32 }
  0x2b   : > { %183 = sbr.rel (%p180_p0) target bundleno = 150 (0x96), region = 36  ;;  %s1878_s14 = sand.u32 (!%p180_p0), 7, %s1872_s12  }
  0x2c   : > { %p205_p1 = scmp.eq.s32.totalorder (!%p180_p0), %s1878_s14, 0  ;;  %p1266_p2 = scmp.ne.s32.totalorder (!%p180_p0), %s1878_s14, 0 }
  0x32   : > { %208 = sbr.rel (%p1266_p2) target bundleno = 97 (0x61), region = 51  ;;  %s209_s20 = sshrl.u32 (!%p1266_p2), %s1872_s12, 3 }
  0x33   : > { %s1885_s22 = sshrl.u32 (!%p1266_p2), %s209_s20, 4 }
  0x34   : > { %p1267_p3 = scmp.le.s32.totalorder (!%p1266_p2), %s1885_s22, 0 }
  0x39   : > { %1175 = sbr.rel (%p1267_p3) target bundleno = 77 (0x4d), region = 167  ;;  %s2414_s23 = smov (!%p1267_p3), %s1874_s13 }
  0x3a   : > { %s2415_s29 = smov (!%p1267_p3), %s1870_s10  ;;  %s1894_s30 = smov (!%p1267_p3), 0  }
  0x3b   : > { %s1896_s5 = smov (!%p1267_p3), 0  }
  0x40 LB: >> { %v240_v0 = vld [vmem:[%s1710_s29 + $0x48] sm:$0xff]  ;;  %v242_v1 = vld [vmem:[%s1710_s29 + $0x50] sm:$0xff]  ;;  %v244_v2 = vld [vmem:[%s1710_s29 + $0x58] sm:$0xff]  ;;  %s350_s6 = sadd.s32 1, %s1714_s30  ;;  %s216_s5 = sadd.s32 1, %s1718_s5   ;;  %s1718_s5 = sphi %s1896_s5, %s216_s5   ;;  %s1714_s30 = sphi %s1894_s30, %s2416_s30   ;;  %s1710_s29 = sphi %s2415_s29, %s355_s29   ;;  %s1706_s23 = sphi %s2414_s23, %s356_s23  }
  0x41   : >> { %v246_v3 = vld [vmem:[%s1710_s29 + $0x60] sm:$0xff]  ;;  %v248_v4 = vld [vmem:[%s1710_s29 + $0x68] sm:$0xff]  ;;  %v250_v5 = vld [vmem:[%s1710_s29 + $0x70] sm:$0xff]  ;;  %319 = vst [vmem:[%s1706_s23 + $0x30] sm:$0xff] %v240_v0  ;;  %p351_p4 = scmp.ge.s32.totalorder %s350_s6, %s1885_s22  ;;  %p215_p7 = scmp.ge.s32.totalorder %s216_s5, %s1885_s22 }
  0x42   : >> { %321 = vst [vmem:[%s1706_s23 + $0x38] sm:$0xff] %v242_v1  ;;  %323 = vst [vmem:[%s1706_s23 + $0x40] sm:$0xff] %v244_v2  ;;  %v252_v6 = vld [vmem:[%s1710_s29 + $0x78] sm:$0xff]  ;;  %v280_v7 = vld [vmem:[%s1710_s29 + $0x80] sm:$0xff] }
  0x43   : >> { %v282_v8 = vld [vmem:[%s1710_s29 + $0x88] sm:$0xff]  ;;  %325 = vst [vmem:[%s1706_s23 + $0x48] sm:$0xff] %v246_v3  ;;  %327 = vst [vmem:[%s1706_s23 + $0x50] sm:$0xff] %v248_v4  ;;  %v284_v9 = vld [vmem:[%s1710_s29 + $0x90] sm:$0xff]  ;;  %s2436_s6 = smov (%p351_p4, %s350_s6), 0 }
  0x44   : >> { %329 = vst [vmem:[%s1706_s23 + $0x58] sm:$0xff] %v250_v5  ;;  %v228_v10 = vld [vmem:[%s1710_s29 + $0x18] sm:$0xff]  ;;  %v260_v11 = vld [vmem:[%s1710_s29 + $0x30] sm:$0xff]  ;;  %331 = vst [vmem:[%s1706_s23 + $0x60] sm:$0xff] %v252_v6  ;;  %s1268_s7 = sshll.u32 %s2436_s6, 7  ;;  %s2416_s30 = smov %s2436_s6 }
  0x45   : >> { %333 = vst [vmem:[%s1706_s23 + $0x68] sm:$0xff] %v280_v7  ;;  %335 = vst [vmem:[%s1706_s23 + $0x70] sm:$0xff] %v282_v8  ;;  %v312_v12 = vld [vmem:[%s1710_s29 + $0x98] sm:$0xff]  ;;  %v314_v13 = vld [vmem:[%s1710_s29 + $0xa0] sm:$0xff] }
  0x46   : >> { %v316_v14 = vld [vmem:[%s1710_s29 + $0xa8] sm:$0xff]  ;;  %255 = vst [vmem:[%s1706_s23 + $0x10] sm:$0xff] %v228_v10  ;;  %287 = vst [vmem:[%s1706_s23 + $0x20] sm:$0xff] %v260_v11  ;;  %v222_v15 = vld [vmem:[%s1710_s29] sm:$0xff]  ;;  %218 = sbr.rel (!%p215_p7) target bundleno = 64 (0x40), region = 173 }
  0x47   : >> { %337 = vst [vmem:[%s1706_s23 + $0x78] sm:$0xff] %v284_v9  ;;  %v224_v16 = vld [vmem:[%s1710_s29 + $0x8] sm:$0xff]  ;;  %v256_v17 = vld [vmem:[%s1710_s29 + $0x20] sm:$0xff]  ;;  %339 = vst [vmem:[%s1706_s23 + $0x80] sm:$0xff] %v312_v12 }
  0x48   : >> { %341 = vst [vmem:[%s1706_s23 + $0x88] sm:$0xff] %v314_v13  ;;  %343 = vst [vmem:[%s1706_s23 + $0x90] sm:$0xff] %v316_v14  ;;  %v288_v18 = vld [vmem:[%s1710_s29 + $0x38] sm:$0xff]  ;;  %v344_v19 = vld [vmem:[%s1710_s29 + $0xb0] sm:$0xff] }
  0x49   : >> { %223 = vst [vmem:[%s1706_s23] sm:$0xff] %v222_v15  ;;  %225 = vst [vmem:[%s1706_s23 + $0x8] sm:$0xff] %v224_v16  ;;  %v346_v20 = vld [vmem:[%s1710_s29 + $0xb8] sm:$0xff]  ;;  %v348_v21 = vld [vmem:[%s1710_s29 + $0xc0] sm:$0xff]  ;;  %s355_s29 = scalar_lea.vmem %s1870_s10, %s1268_s7  }
  0x4a   : >> { %257 = vst [vmem:[%s1706_s23 + $0x18] sm:$0xff] %v256_v17  ;;  %289 = vst [vmem:[%s1706_s23 + $0x28] sm:$0xff] %v288_v18 }
  0x4b   : >> { %345 = vst [vmem:[%s1706_s23 + $0x98] sm:$0xff] %v344_v19  ;;  %347 = vst [vmem:[%s1706_s23 + $0xa0] sm:$0xff] %v346_v20 }
  0x4c   : >> { %349 = vst [vmem:[%s1706_s23 + $0xa8] sm:$0xff] %v348_v21  ;;  %s356_s23 = scalar_lea.vmem %s1874_s13, %s1268_s7 [#allocation2]  }
  0x4d PF: > { %s1970_s8 = sand.u32 15, %s209_s20   ;;  %s1325_s9 = sshll.u32 %s1885_s22, 11 }
  0x4e   : > { %s361_s11 = sshra.s32 %s1325_s9, 4  ;;  %p1273_p8 = scmp.le.s32.totalorder %s1970_s8, 0 }
  0x4f   : > { %s1974_s7 = scalar_lea.vmem %s1870_s10, %s361_s11   ;;  %s1977_s0 = scalar_lea.vmem %s1874_s13, %s361_s11 [#allocation2]  }
  0x50   : > { %1189 = sbr.rel (%p1273_p8) target bundleno = 97 (0x61), region = 178  ;;  %s2417_s23 = smov (!%p1273_p8), %s1977_s0 }
  0x51   : > { %s2418_s29 = smov (!%p1273_p8), %s1974_s7  ;;  %s1986_s30 = smov (!%p1273_p8), 0  }
  0x52   : > { %s1732_s5 = smov (!%p1273_p8), 0  }
  0x57 LB: >> { %v377_v22 = vld [vmem:[%s1726_s29] sm:$0xff]  ;;  %v379_v23 = vld [vmem:[%s1726_s29 + $0x18] sm:$0xff]  ;;  %v381_v24 = vld [vmem:[%s1726_s29 + $0x30] sm:$0xff]  ;;  %s385_s20 = sadd.s32 1, %s1730_s30  ;;  %s371_s5 = sadd.s32 1, %s1734_s5   ;;  %s1734_s5 = sphi %s1732_s5, %s371_s5   ;;  %s1730_s30 = sphi %s1986_s30, %s2419_s30   ;;  %s1726_s29 = sphi %s2418_s29, %s390_s29   ;;  %s1722_s23 = sphi %s2417_s23, %s391_s23  }
  0x58   : >> { %378 = vst [vmem:[%s1722_s23] sm:$0xff] %v377_v22  ;;  %380 = vst [vmem:[%s1722_s23 + $0x10] sm:$0xff] %v379_v23  ;;  %v383_v25 = vld [vmem:[%s1726_s29 + $0x48] sm:$0xff]  ;;  %p386_p12 = scmp.ge.s32.totalorder %s385_s20, %s1970_s8  ;;  %p370_p13 = scmp.ge.s32.totalorder %s371_s5, %s1970_s8 }
  0x59   : >> { %382 = vst [vmem:[%s1722_s23 + $0x20] sm:$0xff] %v381_v24  ;;  %384 = vst [vmem:[%s1722_s23 + $0x30] sm:$0xff] %v383_v25 }
  0x5a   : >> { %s2438_s20 = smov (%p386_p12, %s385_s20), 0  ;;  %373 = sbr.rel (!%p370_p13) target bundleno = 87 (0x57), region = 184 }
  0x5b   : >> { %s1274_s22 = sshll.u32 %s2438_s20, 3  ;;  %s2419_s30 = smov %s2438_s20 }
  0x5c   : >> { %s390_s29 = scalar_lea.vmem %s1974_s7, %s1274_s22   ;;  %s391_s23 = scalar_lea.vmem %s1977_s0, %s1274_s22 [#allocation2]  }
  0x61 PF: > { %394 = sbr.rel (%p205_p1) target bundleno = 150 (0x96), region = 69  ;;  %s396_s6 = ssub.s32 (!%p205_p1), %s1872_s12, %s1878_s14 }
  0x62   : > { %s400_s9 = sshrl.u32 (!%p205_p1), %s1872_s12, 3  ;;  %s2007_s11 = scalar_lea.vmem (!%p205_p1), %s1870_s10, %s396_s6 }
  0x63   : > { %s2010_s30 = scalar_lea.vmem (!%p205_p1), %s1874_s13, %s396_s6 [#allocation2]  ;;  %s2014_s5 = sshrl.u32 (!%p205_p1), %s400_s9, 4 }
  0x64   : > { %p1276_p0 = scmp.le.s32.totalorder (!%p205_p1), %s2014_s5, 0 }
  0x68   : > { %1203 = sbr.rel (%p1276_p0) target bundleno = 124 (0x7c), region = 189  ;;  %s2420_s0 = smov (!%p1276_p0), %s1874_s13 }
  0x69   : > { %s2421_s8 = smov (!%p1276_p0), %s1870_s10  ;;  %s2023_s7 = smov (!%p1276_p0), 0  }
  0x6a   : > { %s2025_s23 = smov (!%p1276_p0), 0  }
  0x6f LB: >> { %v431_v26 = vld [vmem:[%s1742_s8 + $0x48] sm:$0xff]  ;;  %v433_v27 = vld [vmem:[%s1742_s8 + $0x50] sm:$0xff]  ;;  %v435_v28 = vld [vmem:[%s1742_s8 + $0x58] sm:$0xff]  ;;  %s541_s29 = sadd.s32 1, %s1746_s7  ;;  %s407_s23 = sadd.s32 1, %s1750_s23   ;;  %s1750_s23 = sphi %s2025_s23, %s407_s23   ;;  %s1746_s7 = sphi %s2023_s7, %s2422_s7   ;;  %s1742_s8 = sphi %s2421_s8, %s546_s8   ;;  %s1738_s0 = sphi %s2420_s0, %s547_s0  }
  0x70   : >> { %v437_v29 = vld [vmem:[%s1742_s8 + $0x60] sm:$0xff]  ;;  %v439_v30 = vld [vmem:[%s1742_s8 + $0x68] sm:$0xff]  ;;  %v441_v31 = vld [vmem:[%s1742_s8 + $0x70] sm:$0xff]  ;;  %510 = vst [vmem:[%s1738_s0 + $0x30] sm:$0xff] %v431_v26  ;;  %p542_p1 = scmp.ge.s32.totalorder %s541_s29, %s2014_s5  ;;  %p406_p2 = scmp.ge.s32.totalorder %s407_s23, %s2014_s5 }
  0x71   : >> { %512 = vst [vmem:[%s1738_s0 + $0x38] sm:$0xff] %v433_v27  ;;  %514 = vst [vmem:[%s1738_s0 + $0x40] sm:$0xff] %v435_v28  ;;  %v443_v32 = vld [vmem:[%s1742_s8 + $0x78] sm:$0xff]  ;;  %v471_v33 = vld [vmem:[%s1742_s8 + $0x80] sm:$0xff] }
  0x72   : >> { %v473_v34 = vld [vmem:[%s1742_s8 + $0x88] sm:$0xff]  ;;  %516 = vst [vmem:[%s1738_s0 + $0x48] sm:$0xff] %v437_v29  ;;  %518 = vst [vmem:[%s1738_s0 + $0x50] sm:$0xff] %v439_v30  ;;  %v475_v35 = vld [vmem:[%s1742_s8 + $0x90] sm:$0xff]  ;;  %s2440_s29 = smov (%p542_p1, %s541_s29), 0 }
  0x73   : >> { %520 = vst [vmem:[%s1738_s0 + $0x58] sm:$0xff] %v441_v31  ;;  %v419_v36 = vld [vmem:[%s1742_s8 + $0x18] sm:$0xff]  ;;  %v451_v37 = vld [vmem:[%s1742_s8 + $0x30] sm:$0xff]  ;;  %522 = vst [vmem:[%s1738_s0 + $0x60] sm:$0xff] %v443_v32  ;;  %s1277_s20 = sshll.u32 %s2440_s29, 7  ;;  %s2422_s7 = smov %s2440_s29 }
  0x74   : >> { %524 = vst [vmem:[%s1738_s0 + $0x68] sm:$0xff] %v471_v33  ;;  %526 = vst [vmem:[%s1738_s0 + $0x70] sm:$0xff] %v473_v34  ;;  %v503_v38 = vld [vmem:[%s1742_s8 + $0x98] sm:$0xff]  ;;  %v505_v39 = vld [vmem:[%s1742_s8 + $0xa0] sm:$0xff] }
  0x75   : >> { %v507_v40 = vld [vmem:[%s1742_s8 + $0xa8] sm:$0xff]  ;;  %446 = vst [vmem:[%s1738_s0 + $0x10] sm:$0xff] %v419_v36  ;;  %478 = vst [vmem:[%s1738_s0 + $0x20] sm:$0xff] %v451_v37  ;;  %v413_v41 = vld [vmem:[%s1742_s8] sm:$0xff]  ;;  %409 = sbr.rel (!%p406_p2) target bundleno = 111 (0x6f), region = 195 }
  0x76   : >> { %528 = vst [vmem:[%s1738_s0 + $0x78] sm:$0xff] %v475_v35  ;;  %v415_v42 = vld [vmem:[%s1742_s8 + $0x8] sm:$0xff]  ;;  %v447_v43 = vld [vmem:[%s1742_s8 + $0x20] sm:$0xff]  ;;  %530 = vst [vmem:[%s1738_s0 + $0x80] sm:$0xff] %v503_v38 }
  0x77   : >> { %532 = vst [vmem:[%s1738_s0 + $0x88] sm:$0xff] %v505_v39  ;;  %534 = vst [vmem:[%s1738_s0 + $0x90] sm:$0xff] %v507_v40  ;;  %v479_v44 = vld [vmem:[%s1742_s8 + $0x38] sm:$0xff]  ;;  %v535_v45 = vld [vmem:[%s1742_s8 + $0xb0] sm:$0xff] }
  0x78   : >> { %414 = vst [vmem:[%s1738_s0] sm:$0xff] %v413_v41  ;;  %416 = vst [vmem:[%s1738_s0 + $0x8] sm:$0xff] %v415_v42  ;;  %v537_v46 = vld [vmem:[%s1742_s8 + $0xb8] sm:$0xff]  ;;  %v539_v47 = vld [vmem:[%s1742_s8 + $0xc0] sm:$0xff]  ;;  %s546_s8 = scalar_lea.vmem %s1870_s10, %s1277_s20  }
  0x79   : >> { %448 = vst [vmem:[%s1738_s0 + $0x18] sm:$0xff] %v447_v43  ;;  %480 = vst [vmem:[%s1738_s0 + $0x28] sm:$0xff] %v479_v44 }
  0x7a   : >> { %536 = vst [vmem:[%s1738_s0 + $0x98] sm:$0xff] %v535_v45  ;;  %538 = vst [vmem:[%s1738_s0 + $0xa0] sm:$0xff] %v537_v46 }
  0x7b   : >> { %540 = vst [vmem:[%s1738_s0 + $0xa8] sm:$0xff] %v539_v47  ;;  %s547_s0 = scalar_lea.vmem %s1874_s13, %s1277_s20 [#allocation2]  }
  0x7c PF: > { %s2099_s22 = sand.u32 15, %s400_s9   ;;  %s1327_s6 = sshll.u32 %s2014_s5, 11 }
  0x7d   : > { %s552_s20 = sshra.s32 %s1327_s6, 4  ;;  %p1282_p3 = scmp.le.s32.totalorder %s2099_s22, 0 }
  0x7e   : > { %s2103_s24 = scalar_lea.vmem %s1870_s10, %s552_s20   ;;  %s2106_s21 = scalar_lea.vmem %s1874_s13, %s552_s20 [#allocation2]  }
  0x7f   : > { %1217 = sbr.rel (%p1282_p3) target bundleno = 144 (0x90), region = 200  ;;  %s2423_s0 = smov (!%p1282_p3), %s2106_s21 }
  0x80   : > { %s2424_s8 = smov (!%p1282_p3), %s2103_s24  ;;  %s2115_s7 = smov (!%p1282_p3), 0  }
  0x81   : > { %s1764_s23 = smov (!%p1282_p3), 0  }
  0x86 LB: >> { %v568_v48 = vld [vmem:[%s1758_s8] sm:$0xff]  ;;  %v570_v49 = vld [vmem:[%s1758_s8 + $0x18] sm:$0xff]  ;;  %v572_v50 = vld [vmem:[%s1758_s8 + $0x30] sm:$0xff]  ;;  %s576_s9 = sadd.s32 1, %s1762_s7  ;;  %s562_s23 = sadd.s32 1, %s1766_s23   ;;  %s1766_s23 = sphi %s1764_s23, %s562_s23   ;;  %s1762_s7 = sphi %s2115_s7, %s2425_s7   ;;  %s1758_s8 = sphi %s2424_s8, %s581_s8   ;;  %s1754_s0 = sphi %s2423_s0, %s582_s0  }
  0x87   : >> { %569 = vst [vmem:[%s1754_s0] sm:$0xff] %v568_v48  ;;  %571 = vst [vmem:[%s1754_s0 + $0x10] sm:$0xff] %v570_v49  ;;  %v574_v51 = vld [vmem:[%s1758_s8 + $0x48] sm:$0xff]  ;;  %p577_p4 = scmp.ge.s32.totalorder %s576_s9, %s2099_s22  ;;  %p561_p7 = scmp.ge.s32.totalorder %s562_s23, %s2099_s22 }
  0x88   : >> { %573 = vst [vmem:[%s1754_s0 + $0x20] sm:$0xff] %v572_v50  ;;  %575 = vst [vmem:[%s1754_s0 + $0x30] sm:$0xff] %v574_v51 }
  0x89   : >> { %s2442_s9 = smov (%p577_p4, %s576_s9), 0  ;;  %564 = sbr.rel (!%p561_p7) target bundleno = 134 (0x86), region = 206 }
  0x8a   : >> { %s1283_s5 = sshll.u32 %s2442_s9, 3  ;;  %s2425_s7 = smov %s2442_s9 }
  0x8b   : >> { %s581_s8 = scalar_lea.vmem %s2103_s24, %s1283_s5   ;;  %s582_s0 = scalar_lea.vmem %s2106_s21, %s1283_s5 [#allocation2]  }
  0x90 PF: > { %s1768_s29 = smov 0  }
  0x91   : > { %s583_s6 = sshllo.u32 %s1768_s29, %s1878_s14 }
  0x92   : > { %v592_v52 = vld [vmem:[%s2007_s11] sm:%s583_s6]  ;;  %v594_v53 = vld [vmem:[%s2007_s11 + $0x18] sm:%s583_s6] }
  0x93   : > { %593 = vst [vmem:[%s2010_s30] sm:%s583_s6] %v592_v52  ;;  %595 = vst [vmem:[%s2010_s30 + $0x10] sm:%s583_s6] %v594_v53 }
  0x94   : > { %v596_v54 = vld [vmem:[%s2007_s11 + $0x30] sm:%s583_s6]  ;;  %v598_v55 = vld [vmem:[%s2007_s11 + $0x48] sm:%s583_s6] }
  0x95   : > { %597 = vst [vmem:[%s2010_s30 + $0x20] sm:%s583_s6] %v596_v54  ;;  %599 = vst [vmem:[%s2010_s30 + $0x30] sm:%s583_s6] %v598_v55 }
  0x96 PF: > { %p1285_p8 = scmp.ge.u32.totalorder %s1872_s12, 8 }
  0x97   : > { %s1769_s21 = smov (!%p1285_p8), 0  }
  0x98   : > { %186 = sbr.rel (%p1285_p8) target bundleno = 159 (0x9f), region = 40  ;;  %s187_s24 = sshllo.u32 (!%p1285_p8), %s1769_s21, %s1872_s12 }
  0x99   : > { %v196_v56 = vld [vmem:[%s1870_s10] sm:%s187_s24] (!%p1285_p8)  ;;  %v198_v57 = vld [vmem:[%s1870_s10 + $0x18] sm:%s187_s24] (!%p1285_p8) }
  0x9a   : > { %197 = vst [vmem:[%s1874_s13] sm:%s187_s24] (!%p1285_p8), %v196_v56  ;;  %199 = vst [vmem:[%s1874_s13 + $0x10] sm:%s187_s24] (!%p1285_p8), %v198_v57 }
  0x9b   : > { %v200_v58 = vld [vmem:[%s1870_s10 + $0x30] sm:%s187_s24] (!%p1285_p8)  ;;  %v202_v59 = vld [vmem:[%s1870_s10 + $0x48] sm:%s187_s24] (!%p1285_p8) }
  0x9c   : > { %201 = vst [vmem:[%s1874_s13 + $0x20] sm:%s187_s24] (!%p1285_p8), %v200_v58  ;;  %203 = vst [vmem:[%s1874_s13 + $0x30] sm:%s187_s24] (!%p1285_p8), %v202_v59 }
  0x9f PF: > { %603 = sbr.rel (!%p1842_p5) target bundleno = 194 (0xc2), region = 94  ;;  %s604_s14 = sand.u32 (%p1842_p5), 1, %s1698_s17  }
  0xa0   : > { %s1287_s11 = sshll.u32 (%p1842_p5), %s1702_s18, 1  ;;  %s1286_s30 = sshll.u32 (%p1842_p5), %s604_s14, 6 }
  0xa1   : > { %s610_s12 = ssub.s32 (%p1842_p5), 3, %s1287_s11  ;;  %s2159_s13 = scalar_lea.sflag (%p1842_p5), [#allocation4], %s604_s14 }
  0xa2   : > { %p611_p12 = scmp.lt.s32.totalorder (%p1842_p5), %s610_s12, 2  ;;  %s608_s20 = scalar_lea.vmem (%p1842_p5), [#allocation3], %s1286_s30 }
  0xa6   : > { %s2444_s12 = smov (!%p611_p12, %s610_s12), 2 }
  0xa7   : > { %s2156_s22 = sshll.u32 %s2444_s12, 9 }
  0xa8   : > { %s615_s10 = ssub.s32 1024, %s2156_s22 }
  0xa9   : > { %616 = vsyncadd %s2159_s13, %s615_s10  ;;  %p1289_p5 = scmp.ne.s32.totalorder %s2156_s22, 0  ;;  %s1329_s25 = sshll.u32 %s1702_s18, 8 }
  0xaa   : > { %s2167_s7 = scalar_lea.hbm %s2399_s1, %s1329_s25  ;;  %s1291_s23 = sshll.u32 %s2444_s12, 3 }
  0xab   : > { %s622_s9 = sshll.u32 %s608_s20, 4  ;;  %s1544_s5 = scalar_lea.hbm %s2167_s7, %s2156_s22  ;;  %s2170_s9 = int_to_ptr.vmem [resolvable:$true] %s622_s9 }
  0xac   : > { %p1545_p13 = scmp.ne.s32.totalorder %s2167_s7, %s1544_s5  ;;  %s1548_s21 = scalar_lea.hbm %s2399_s1, 1536 }
  0xad   : > { %p1549_p2 = scmp.lt.u32.totalorder %s2167_s7, %s2399_s1  ;;  %p1550_p3 = scmp.lt.u32.totalorder %s1548_s21, %s1544_s5 }
  0xae   : > { %p1546_p0 = pnand %p1545_p13, %p1289_p5  ;;  %p1552_p7 = scmp.lt.u32.totalorder %s1544_s5, %s2167_s7 }
  0xaf   : > { %p1551_p4 = por %p1550_p3, %p1549_p2 }
  0xb0   : > { %p1547_p1 = pneg %p1546_p0 }
  0xb1   : > { %p1553_p8 = por %p1552_p7, %p1551_p4 }
  0xb3   : > { %p1554_p12 = pnand %p1553_p8, %p1547_p1 }
  0xb5   : > { %1557 = shalt.err (!%p1554_p12)
}
  0xb6   : > { %s1558_s11 = scalar_lea.vmem %s2170_s9, %s2156_s22  ;;  %s1770_s30 = smov [#allocation3]  }
  0xb7   : > { %p1559_p13 = scmp.ne.s32.totalorder %s2170_s9, %s1558_s11  ;;  %s1562_s10 = sshll.u32 %s1770_s30, 4  ;;  %s1563_s10 = int_to_ptr.vmem [resolvable:$false] %s1562_s10 }
  0xb8   : > { %s1564_s20 = scalar_lea.vmem %s1563_s10, 2048  ;;  %p1565_p10 = scmp.lt.s32.totalorder %s2170_s9, %s1563_s10 }
  0xb9   : > { %p1560_p0 = pnand %p1559_p13, %p1289_p5  ;;  %p1566_p2 = scmp.lt.s32.totalorder %s1564_s20, %s1558_s11 }
  0xbb   : > { %p1561_p11 = pneg %p1560_p0  ;;  %p1567_p3 = por %p1566_p2, %p1565_p10 }
  0xbd   : > { %p1568_p4 = pnand %p1567_p3, %p1561_p11 }
  0xbf   : > { %1571 = shalt.err (!%p1568_p4)
}
  0xc0   : > { %s1771_s25 = smov 384   ;;  %s1772_s0 = smov 256  }
  0xc1   : > { %628 = dma.hbm_to_vmem [thread:$0]  (%p1289_p5), %s2167_s7, %s2156_s22, %s2170_s9, %s2159_s13, %s1771_s25, %s1772_s0, %s1291_s23  }
  0xc2 PF: > { %p1294_p1 = scmp.ge.s32.totalorder %s1702_s18, 1  ;;  %p630_p7 = scmp.lt.s32.totalorder %s1702_s18, 3 }
  0xc4   : > { %p631_p10 = pnand %p1294_p1, %p630_p7 }
  0xc5   : > { %s2202_s8 = sand.u32 (!%p631_p10), 1, %s1694_s16  }
  0xc6   : > { %634 = sbr.rel (%p631_p10) target bundleno = 496 (0x1f0), region = 98  ;;  %s1295_s5 = sshll.u32 (!%p631_p10), %s2202_s8, 6 }
  0xc7   : > { %s2205_s29 = scalar_lea.vmem (!%p631_p10), [#allocation2], %s1295_s5  ;;  %s644_s6 = scalar_lea.sflag (!%p631_p10), [#allocation4], %s2202_s8 }
  0xc8   : > { %s2208_s12 = scalar_lea.vmem (!%p631_p10), [#allocation3], %s1295_s5 }
  0xcd   : > { %1681 = dma.done.wait (%p1846_p6), %s644_s6, 1024  }
  0xce   : > { %1683 = vsyncadd (%p1846_p6), %s644_s6, 4294966272  ;;  %v1773_v60 = vmov 0.0   ;;  %v1774_v61 = vmov 0   ;;  %v708_v62 = vld [vmem:[%s2208_s12 + $0x8] sm:$0xff]  ;;  %v710_v63 = vld [vmem:[%s2208_s12 + $0x18] sm:$0xff]  ;;  %vm715_vm0 = vcmask 261120  }
  0xcf   : > { %804 = vmatprep.mubr.f32.mxu1 %v1773_v60  ;;  %917 = vmatprep.mubr.f32.mxu0 %v1773_v60  ;;  %v700_v0 = vld [vmem:[%s2205_s29 + $0x8] sm:$0xff]  ;;  %v1335_v1 = vpack.c.bf16 %v710_v63, %v708_v62  ;;  %v702_v2 = vld [vmem:[%s2205_s29 + $0x18] sm:$0xff]  ;;  %v707_v3 = vld [vmem:[%s2208_s12] sm:$0xff]  ;;  %s1297_s25 = sshll.u32 %s2202_s8, 7  ;;  %s1063_s5 = scalar_lea.sflag [#allocation5], %s2202_s8 }
  0xd0   : > { %1542 = vset.pattern.permute.xlu0 %v1774_v61  ;;  %1543 = vset.pattern.permute.xlu1 %v1774_v61  ;;  %v709_v4 = vld [vmem:[%s2208_s12 + $0x10] sm:$0xff]  ;;  %v1343_v5 = vpack.c.bf16 %v702_v2, %v700_v0  ;;  %v699_v7 = vld [vmem:[%s2205_s29] sm:$0xff]  ;;  %v712_v9 = vld [vmem:[%s2208_s12 + $0x28] sm:$0xff]  ;;  %s2311_s0 = scalar_lea.vmem [#allocation6], %s1297_s25 }
  0xd1   : > { %v1337_v6 = vpack.c.bf16 %v709_v4, %v707_v3  ;;  %v701_v8 = vld [vmem:[%s2205_s29 + $0x10] sm:$0xff]  ;;  %1336 = vmatprep.subr.bf16.mxu1 %v1335_v1  ;;  %v714_v11 = vld [vmem:[%s2208_s12 + $0x38] sm:$0xff]  ;;  %v704_v12 = vld [vmem:[%s2205_s29 + $0x28] sm:$0xff] }
  0xd2   : > { %v1345_v10 = vpack.c.bf16 %v701_v8, %v699_v7  ;;  %v706_v13 = vld [vmem:[%s2205_s29 + $0x38] sm:$0xff]  ;;  %1344 = vmatprep.subr.bf16.mxu0 %v1343_v5  ;;  %v1339_v14 = vpack.c.bf16 %v714_v11, %v712_v9  ;;  %v711_v16 = vld [vmem:[%s2208_s12 + $0x20] sm:$0xff]  ;;  %v713_v17 = vld [vmem:[%s2208_s12 + $0x30] sm:$0xff] }
  0xd3   : > { %1338 = vmatpush1.bf16.msra.mxu1 %v1337_v6  ;;  %v1347_v15 = vpack.c.bf16 %v706_v13, %v704_v12  ;;  %v703_v18 = vld [vmem:[%s2205_s29 + $0x20] sm:$0xff]  ;;  %v1341_v19 = vpack.c.bf16 %v713_v17, %v711_v16  ;;  %v705_v20 = vld [vmem:[%s2205_s29 + $0x30] sm:$0xff]  ;;  %v967_v25 = vld [vmem:[%s2401_s3 + $0x8] sm:$0xff]  ;;  %s1315_s29 = sshll.u32 (%p1851_p9), %s1824_s19, 1 }
  0xd4   : > { %1346 = vmatpush1.bf16.msra.mxu0 %v1345_v10  ;;  %1340 = vmatprep.subr.bf16.mxu1 %v1339_v14  ;;  %v1349_v21 = vpack.c.bf16 %v705_v20, %v703_v18  ;;  %v691_v22 = vld [vmem:[%s2400_s2] sm:$0xff]  ;;  %v968_v24 = vld [vmem:[%s2401_s3 + $0x10] sm:$0xff]  ;;  %v969_v26 = vld [vmem:[%s2401_s3 + $0x18] sm:$0xff]  ;;  %s1071_s6 = ssub.s32 (%p1851_p9), 3, %s1315_s29 }
  0xd5   : > { %1348 = vmatprep.subr.bf16.mxu0 %v1347_v15  ;;  %v966_v23 = vld [vmem:[%s2401_s3] sm:$0xff]  ;;  %986 = vperm.xlu1 %1543, %v968_v24   ;;  %v692_v27 = vld [vmem:[%s2400_s2 + $0x8] sm:$0xff]  ;;  %v693_v30 = vld [vmem:[%s2400_s2 + $0x10] sm:$0xff]  ;;  %p1072_p6 = scmp.lt.s32.totalorder (%p1851_p9), %s1071_s6, 2 }
  0xd6   : > { %976 = vperm.xlu0 %1542, %v966_v23   ;;  %v970_v28 = vld [vmem:[%s2401_s3 + $0x20] sm:$0xff]  ;;  %v971_v29 = vld [vmem:[%s2401_s3 + $0x28] sm:$0xff]  ;;  %v972_v31 = vld [vmem:[%s2401_s3 + $0x30] sm:$0xff] }
  0xd7   : > { %1342 = vmatpush1.bf16.msra.mxu1 %v1341_v19  ;;  %v973_v32 = vld [vmem:[%s2401_s3 + $0x38] sm:$0xff]  ;;  %v695_v34 = vld [vmem:[%s2400_s2 + $0x20] sm:$0xff]  ;;  %v696_v35 = vld [vmem:[%s2400_s2 + $0x28] sm:$0xff] }
  0xd8   : > { %1350 = vmatpush1.bf16.msra.mxu0 %v1349_v21  ;;  %v694_v33 = vld [vmem:[%s2400_s2 + $0x18] sm:$0xff]  ;;  %v697_v36 = vld [vmem:[%s2400_s2 + $0x30] sm:$0xff] }
  0xd9   : > { %991 = vperm.xlu1 %1543, %v969_v26   ;;  %v698_v37 = vld [vmem:[%s2400_s2 + $0x38] sm:$0xff] }
  0xda   : > { %1298 = vmatmul.mubr.msk.f32.vlgmr.msra.gmra.mrb[0].mxu1 %vm715_vm0, %v691_v22  ;;  %981 = vperm.xlu0 %1542, %v967_v25  }
  0xdb   : > { %1306 = vmatmul.mubr.msk.f32.vlgmr.msra.gmra.mrb[0].mxu0 %vm715_vm0, %v691_v22  ;;  %810 = vmatprep.mubr.f32.mxu1 %v1773_v60 }
  0xdc   : > { %923 = vmatprep.mubr.f32.mxu0 %v1773_v60 }
  0xdd   : > { %1001 = vperm.xlu1 %1543, %v971_v29  }
  0xde   : > { %1299 = vmatmul.mubr.msk.f32.gmra.mrb[2].mxu1 %vm715_vm0, %v692_v27  ;;  %996 = vperm.xlu0 %1542, %v970_v28  }
  0xdf   : > { %1307 = vmatmul.mubr.msk.f32.gmra.mrb[2].mxu0 %vm715_vm0, %v692_v27  ;;  %816 = vmatprep.mubr.f32.mxu1 %v1773_v60 }
  0xe0   : > { %929 = vmatprep.mubr.f32.mxu0 %v1773_v60 }
  0xe1   : > { %1011 = vperm.xlu1 %1543, %v973_v32  }
  0xe2   : > { %1300 = vmatmul.mubr.msk.f32.gmra.mrb[4].mxu1 %vm715_vm0, %v693_v30  ;;  %1006 = vperm.xlu0 %1542, %v972_v31  }
  0xe3   : > { %1308 = vmatmul.mubr.msk.f32.gmra.mrb[4].mxu0 %vm715_vm0, %v693_v30  ;;  %822 = vmatprep.mubr.f32.mxu1 %v1773_v60 }
  0xe4   : > { %935 = vmatprep.mubr.f32.mxu0 %v1773_v60 }
  0xe6   : > { %1301 = vmatmul.mubr.msk.f32.gmra.mrb[6].mxu1 %vm715_vm0, %v694_v33 }
  0xe7   : > { %1309 = vmatmul.mubr.msk.f32.gmra.mrb[6].mxu0 %vm715_vm0, %v694_v33  ;;  %828 = vmatprep.mubr.f32.mxu1 %v1773_v60 }
  0xe8   : > { %941 = vmatprep.mubr.f32.mxu0 %v1773_v60 }
  0xea   : > { %1302 = vmatmul.mubr.msk.f32.gmra.mrb[8].mxu1 %vm715_vm0, %v695_v34 }
  0xeb   : > { %1310 = vmatmul.mubr.msk.f32.gmra.mrb[8].mxu0 %vm715_vm0, %v695_v34  ;;  %834 = vmatprep.mubr.f32.mxu1 %v1773_v60 }
  0xec   : > { %947 = vmatprep.mubr.f32.mxu0 %v1773_v60 }
  0xee   : > { %1303 = vmatmul.mubr.msk.f32.gmra.mrb[10].mxu1 %vm715_vm0, %v696_v35 }
  0xef   : > { %1311 = vmatmul.mubr.msk.f32.gmra.mrb[10].mxu0 %vm715_vm0, %v696_v35  ;;  %840 = vmatprep.mubr.f32.mxu1 %v1773_v60 }
  0xf0   : > { %953 = vmatprep.mubr.f32.mxu0 %v1773_v60 }
  0xf2   : > { %1304 = vmatmul.mubr.msk.f32.gmra.mrb[12].mxu1 %vm715_vm0, %v697_v36 }
  0xf3   : > { %1312 = vmatmul.mubr.msk.f32.gmra.mrb[12].mxu0 %vm715_vm0, %v697_v36  ;;  %846 = vmatprep.mubr.f32.mxu1 %v1773_v60 }
  0xf4   : > { %959 = vmatprep.mubr.f32.mxu0 %v1773_v60 }
  0xf6   : > { %1305 = vmatmul.mubr.msk.f32.gmra.mrb[14].mxu1 %vm715_vm0, %v698_v37 }
  0xf7   : > { %1313 = vmatmul.mubr.msk.f32.gmra.mrb[14].mxu0 %vm715_vm0, %v698_v37 }
 0x154   : > { %v987_v57 = vpop.permute.xlu1 %986 }
 0x155   : > { %v977_v38 = vpop.permute.xlu0 %976 }
 0x158   : > { %v992_v12 = vpop.permute.xlu1 %991 }
 0x159   : > { %v982_v47 = vpop.permute.xlu0 %981 }
 0x15c   : > { %v1002_v33 = vpop.permute.xlu1 %1001 }
 0x15d   : > { %v997_v23 = vpop.permute.xlu0 %996 }
 0x1ad   : > { %v806_v39 = vpop.f32.mrb[0].mxu1 }
 0x1ae   : > { %v919_v40 = vpop.f32.mrb[0].mxu0  ;;  %v808_v41 = vpop.f32.mrb[1].mxu1 }
 0x1af   : > { %v920_v42 = vadd.f32 %v919_v40, %v806_v39  ;;  %v921_v43 = vpop.f32.mrb[1].mxu0 }
 0x1b0   : > { %v922_v44 = vadd.f32 %v921_v43, %v808_v41 }
 0x1b1   : > { %v1014_v45 = vadd.f32 %v977_v38, %v920_v42  ;;  %v812_v46 = vpop.f32.mrb[2].mxu1 }
 0x1b2   : > { %v1015_v48 = vadd.f32 %v977_v38, %v922_v44  ;;  %v925_v49 = vpop.f32.mrb[2].mxu0  ;;  %v814_v50 = vpop.f32.mrb[3].mxu1 }
 0x1b3   : > { %v1030_v51 = vmax.f32 %v1014_v45, 0.0  ;;  %v926_v52 = vadd.f32 %v925_v49, %v812_v46  ;;  %v927_v53 = vpop.f32.mrb[3].mxu0  ;;  %v1007_v44 = vpop.permute.xlu0 %1006 }
 0x1b4   : > { %v1031_v54 = vmax.f32 %v1015_v48, 0.0  ;;  %v928_v55 = vadd.f32 %v927_v53, %v814_v50 }
 0x1b5   : > { %1046 = vst [vmem:[%s2311_s0] sm:$0xff] %v1030_v51  ;;  %v1016_v56 = vadd.f32 %v982_v47, %v926_v52  ;;  %v818_v58 = vpop.f32.mrb[4].mxu1 }
 0x1b6   : > { %1047 = vst [vmem:[%s2311_s0 + $0x8] sm:$0xff] %v1031_v54  ;;  %v1017_v59 = vadd.f32 %v982_v47, %v928_v55  ;;  %v931_v60 = vpop.f32.mrb[4].mxu0  ;;  %v820_v61 = vpop.f32.mrb[5].mxu1 }
 0x1b7   : > { %v1032_v62 = vmax.f32 %v1016_v56, 0.0  ;;  %v932_v63 = vadd.f32 %v931_v60, %v818_v58  ;;  %v933_v0 = vpop.f32.mrb[5].mxu0  ;;  %v1012_v55 = vpop.permute.xlu1 %1011 }
 0x1b8   : > { %v1033_v1 = vmax.f32 %v1017_v59, 0.0  ;;  %v934_v2 = vadd.f32 %v933_v0, %v820_v61 }
 0x1b9   : > { %1048 = vst [vmem:[%s2311_s0 + $0x10] sm:$0xff] %v1032_v62  ;;  %v1018_v3 = vadd.f32 %v987_v57, %v932_v63  ;;  %v824_v4 = vpop.f32.mrb[6].mxu1 }
 0x1ba   : > { %1049 = vst [vmem:[%s2311_s0 + $0x18] sm:$0xff] %v1033_v1  ;;  %v1019_v5 = vadd.f32 %v987_v57, %v934_v2  ;;  %v937_v6 = vpop.f32.mrb[6].mxu0  ;;  %v826_v7 = vpop.f32.mrb[7].mxu1 }
 0x1bb   : > { %v1034_v8 = vmax.f32 %v1018_v3, 0.0  ;;  %v938_v9 = vadd.f32 %v937_v6, %v824_v4  ;;  %v939_v10 = vpop.f32.mrb[7].mxu0 }
 0x1bc   : > { %v1035_v11 = vmax.f32 %v1019_v5, 0.0  ;;  %v940_v13 = vadd.f32 %v939_v10, %v826_v7 }
 0x1bd   : > { %1050 = vst [vmem:[%s2311_s0 + $0x20] sm:$0xff] %v1034_v8  ;;  %v1020_v14 = vadd.f32 %v992_v12, %v938_v9  ;;  %v830_v15 = vpop.f32.mrb[8].mxu1 }
 0x1be   : > { %1051 = vst [vmem:[%s2311_s0 + $0x28] sm:$0xff] %v1035_v11  ;;  %v1021_v16 = vadd.f32 %v992_v12, %v940_v13  ;;  %v943_v17 = vpop.f32.mrb[8].mxu0  ;;  %v832_v18 = vpop.f32.mrb[9].mxu1 }
 0x1bf   : > { %v1036_v19 = vmax.f32 %v1020_v14, 0.0  ;;  %v944_v20 = vadd.f32 %v943_v17, %v830_v15  ;;  %v945_v21 = vpop.f32.mrb[9].mxu0 }
 0x1c0   : > { %v1037_v22 = vmax.f32 %v1021_v16, 0.0  ;;  %v946_v24 = vadd.f32 %v945_v21, %v832_v18 }
 0x1c1   : > { %1052 = vst [vmem:[%s2311_s0 + $0x30] sm:$0xff] %v1036_v19  ;;  %v1022_v25 = vadd.f32 %v997_v23, %v944_v20  ;;  %v836_v26 = vpop.f32.mrb[10].mxu1 }
 0x1c2   : > { %1053 = vst [vmem:[%s2311_s0 + $0x38] sm:$0xff] %v1037_v22  ;;  %v1023_v27 = vadd.f32 %v997_v23, %v946_v24  ;;  %v949_v28 = vpop.f32.mrb[10].mxu0  ;;  %v838_v29 = vpop.f32.mrb[11].mxu1 }
 0x1c3   : > { %v1038_v30 = vmax.f32 %v1022_v25, 0.0  ;;  %v950_v31 = vadd.f32 %v949_v28, %v836_v26  ;;  %v951_v32 = vpop.f32.mrb[11].mxu0 }
 0x1c4   : > { %v1039_v34 = vmax.f32 %v1023_v27, 0.0  ;;  %v952_v35 = vadd.f32 %v951_v32, %v838_v29 }
 0x1c5   : > { %1054 = vst [vmem:[%s2311_s0 + $0x40] sm:$0xff] %v1038_v30  ;;  %v1024_v36 = vadd.f32 %v1002_v33, %v950_v31  ;;  %v842_v37 = vpop.f32.mrb[12].mxu1 }
 0x1c6   : > { %1055 = vst [vmem:[%s2311_s0 + $0x48] sm:$0xff] %v1039_v34  ;;  %v1025_v38 = vadd.f32 %v1002_v33, %v952_v35  ;;  %v955_v39 = vpop.f32.mrb[12].mxu0  ;;  %v844_v40 = vpop.f32.mrb[13].mxu1 }
 0x1c7   : > { %v1040_v41 = vmax.f32 %v1024_v36, 0.0  ;;  %v956_v42 = vadd.f32 %v955_v39, %v842_v37  ;;  %v957_v43 = vpop.f32.mrb[13].mxu0 }
 0x1c8   : > { %v1041_v45 = vmax.f32 %v1025_v38, 0.0  ;;  %v958_v46 = vadd.f32 %v957_v43, %v844_v40 }
 0x1c9   : > { %1056 = vst [vmem:[%s2311_s0 + $0x50] sm:$0xff] %v1040_v41  ;;  %v1026_v47 = vadd.f32 %v1007_v44, %v956_v42  ;;  %v848_v48 = vpop.f32.mrb[14].mxu1 }
 0x1ca   : > { %1057 = vst [vmem:[%s2311_s0 + $0x58] sm:$0xff] %v1041_v45  ;;  %v1027_v49 = vadd.f32 %v1007_v44, %v958_v46  ;;  %v961_v50 = vpop.f32.mrb[14].mxu0  ;;  %v850_v51 = vpop.f32.mrb[15].mxu1 }
 0x1cb   : > { %v1042_v52 = vmax.f32 %v1026_v47, 0.0  ;;  %v962_v53 = vadd.f32 %v961_v50, %v848_v48  ;;  %v963_v54 = vpop.f32.mrb[15].mxu0 }
 0x1cc   : > { %v1043_v56 = vmax.f32 %v1027_v49, 0.0  ;;  %v964_v57 = vadd.f32 %v963_v54, %v850_v51  ;;  %1069 = sbr.rel (!%p1851_p9) target bundleno = 496 (0x1f0), region = 110 }
 0x1cd   : > { %1058 = vst [vmem:[%s2311_s0 + $0x60] sm:$0xff] %v1042_v52  ;;  %v1028_v58 = vadd.f32 %v1012_v55, %v962_v53 }
 0x1ce   : > { %1059 = vst [vmem:[%s2311_s0 + $0x68] sm:$0xff] %v1043_v56  ;;  %v1029_v59 = vadd.f32 %v1012_v55, %v964_v57 }
 0x1cf   : > { %v1044_v60 = vmax.f32 %v1028_v58, 0.0 }
 0x1d0   : > { %v1045_v61 = vmax.f32 %v1029_v59, 0.0 }
 0x1d1   : > { %1060 = vst [vmem:[%s2311_s0 + $0x70] sm:$0xff] %v1044_v60 }
 0x1d2   : > { %1061 = vst [vmem:[%s2311_s0 + $0x78] sm:$0xff] %v1045_v61 }
 0x1d3   : > { %s2446_s6 = smov (!%p1072_p6, %s1071_s6), 2 }
 0x1d4   : > { %s2336_s12 = sshll.u32 %s2446_s6, 10 }
 0x1d5   : > { %s1076_s26 = ssub.s32 2048, %s2336_s12 }
 0x1d6   : > { %1077 = vsyncadd %s1063_s5, %s1076_s26  ;;  %p1317_p9 = scmp.ne.s32.totalorder %s2336_s12, 0  ;;  %s1332_s27 = sshll.u32 %s1824_s19, 8 }
 0x1d7   : > { %s2346_s7 = scalar_lea.hbm %s2402_s4, %s1332_s27  ;;  %s1319_s23 = sshll.u32 %s2446_s6, 3 }
 0x1d8   : > { %s1083_s9 = sshll.u32 %s2311_s0, 4  ;;  %s1775_s24 = smov [#allocation6]   ;;  %s2350_s9 = int_to_ptr.vmem [resolvable:$true] %s1083_s9 }
 0x1d9   : > { %s1572_s21 = scalar_lea.vmem %s2350_s9, %s2336_s12  ;;  %s1576_s14 = sshll.u32 %s1775_s24, 4  ;;  %s1577_s14 = int_to_ptr.vmem [resolvable:$false] %s1576_s14 }
 0x1da   : > { %p1573_p11 = scmp.ne.s32.totalorder %s2350_s9, %s1572_s21  ;;  %s1578_s19 = scalar_lea.vmem %s1577_s14, 4096 }
 0x1db   : > { %p1579_p12 = scmp.lt.s32.totalorder %s2350_s9, %s1577_s14  ;;  %p1580_p13 = scmp.lt.s32.totalorder %s1578_s19, %s1572_s21 }
 0x1dc   : > { %p1574_p5 = pnand %p1573_p11, %p1317_p9 }
 0x1dd   : > { %p1581_p0 = por %p1580_p13, %p1579_p12 }
 0x1de   : > { %p1575_p8 = pneg %p1574_p5 }
 0x1e0   : > { %p1582_p2 = pnand %p1581_p0, %p1575_p8 }
 0x1e2   : > { %1585 = shalt.err (!%p1582_p2)
}
 0x1e3   : > { %s1586_s11 = scalar_lea.hbm %s2346_s7, %s2336_s12  ;;  %s1590_s20 = scalar_lea.hbm %s2402_s4, 3072 }
 0x1e4   : > { %p1587_p3 = scmp.ne.s32.totalorder %s2346_s7, %s1586_s11  ;;  %p1591_p7 = scmp.lt.u32.totalorder %s2346_s7, %s2402_s4 }
 0x1e5   : > { %p1592_p10 = scmp.lt.u32.totalorder %s1590_s20, %s1586_s11  ;;  %p1594_p11 = scmp.lt.u32.totalorder %s1586_s11, %s2346_s7 }
 0x1e6   : > { %p1588_p4 = pnand %p1587_p3, %p1317_p9 }
 0x1e7   : > { %p1593_p6 = por %p1592_p10, %p1591_p7 }
 0x1e8   : > { %p1589_p1 = pneg %p1588_p4 }
 0x1e9   : > { %p1595_p5 = por %p1594_p11, %p1593_p6 }
 0x1eb   : > { %p1596_p8 = pnand %p1595_p5, %p1589_p1 }
 0x1ed   : > { %1599 = shalt.err (!%p1596_p8)
}
 0x1ee   : > { %s1776_s29 = smov 256   ;;  %s1777_s26 = smov 384  }
 0x1ef   : > { %1089 = dma.vmem_to_hbm [thread:$0]  (%p1317_p9), %s2350_s9, %s2336_s12, %s2346_s7, %s1063_s5, %s1776_s29, %s1777_s26, %s1319_s23  }
 0x1f0 PF: > { %s1098_s27 = sand.u32 1, %s1690_s15   ;;  %p2426_p12 = scmp.ne.s32.totalorder %s2412_s28, 0 }
 0x1f1   : > { %p2427_p13 = scmp.ge.s32.totalorder %s1702_s18, 2  ;;  %s1099_s22 = scalar_lea.sflag [#allocation5], %s1098_s27 }
 0x1f3   : > { %p1370_p0 = pnand %p2427_p13, %p2426_p12 }
 0x1f5   : > { %1685 = dma.done.wait (!%p1370_p0), %s1099_s22, 2048  }
 0x1f6   : > { %1687 = vsyncadd (!%p1370_p0), %s1099_s22, 4294965248  ;;  %s2428_s18 = sld [smem:[#allocation9_spill]]  ;;  %s2429_s13 = sld [smem:[#allocation10_spill]] }
 0x1f7   : > { %s2430_s15 = smov %s1694_s16  ;;  %s2431_s16 = smov %s1698_s17 }
 0x1fc   : > { %p17_p2 = scmp.ge.s32.totalorder %s2428_s18, 4   ;;  %s2432_s17 = smov %s2429_s13 }
 0x1fe   :  { %19 = sbr.rel (!%p17_p2) target bundleno = 7 (0x7), region = 217 }
 0x205   :  { %1104 = vsyncpa [#allocation4], 1 }
 0x206   :  { %1106 = vsyncpa [#allocation4 + $0x1], 1 }
 0x207   :  { %1107 = vsyncpa [#allocation5], 1 }
 0x208   :  { %1109 = vsyncpa [#allocation5 + $0x1], 1 }

</bundles_post_ra>
